<compile_context>
chip_gen: v7x
topology: tpu7x:2x2x1
jax: 0.10.0
libtpu: 0.0.40
codegen_flags: <defaults>
</compile_context>

<pallas_src>
import functools

import jax
import jax.numpy as jnp
from jax import lax
from jax.experimental import pallas as pl
from jax.experimental.pallas import tpu as pltpu

BLOCK_SIZE = 256      # max sequence length (tril buffer size in the module)
DROPOUT_P = 0.2
N_EMBD = 384


def _head_kernel(x_ref, w_ref, *rest, scale, training, hs):
    if training:
        drop_ref, o_ref = rest
    else:
        (o_ref,) = rest

    bblk, T, C = x_ref.shape

    # ---- fused QKV projection: one MXU matmul, N = 3*hs --------------------
    x2d = x_ref[...].reshape(bblk * T, C)                                # bf16
    qkv = jnp.dot(x2d, w_ref[...],
                  preferred_element_type=jnp.float32)                   # (bblk*T, 3hs) f32

    # Scale q here (bblk*T*hs mults) instead of wei (bblk*T*T mults).
    q = (qkv[:, :hs] * scale).astype(jnp.bfloat16).reshape(bblk, T, hs)
    k = qkv[:, hs:2 * hs].astype(jnp.bfloat16).reshape(bblk, T, hs)
    v = qkv[:, 2 * hs:].astype(jnp.bfloat16).reshape(bblk, T, hs)

    # ---- causal additive bias (built once per grid step, shared over bblk) --
    row = lax.broadcasted_iota(jnp.int32, (T, T), 0)
    col = lax.broadcasted_iota(jnp.int32, (T, T), 1)
    bias = jnp.where(row >= col, 0.0, -1e30).astype(jnp.float32)         # (T, T)

    # ---- attention scores, batched over the bblk block ----------------------
    wei = jnp.einsum("bqh,bkh->bqk", q, k,
                     preferred_element_type=jnp.float32) + bias[None]    # (bblk,T,T) f32

    # Numerically-stable softmax numerator; normalization deferred to the end.
    wei = wei - jnp.max(wei, axis=-1, keepdims=True)
    p = jnp.exp(wei)                                   # entries in (0, 1]
    denom = jnp.sum(p, axis=-1, keepdims=True)         # (bblk, T, 1) pre-dropout

    if training:
        # Inverted dropout: mask holds 0 or 1/(1-p) exactly (bf16-safe).
        p = p * drop_ref[...].astype(jnp.float32)

    out = jnp.einsum("bqk,bkh->bqh", p.astype(jnp.bfloat16), v,
                     preferred_element_type=jnp.float32)                 # (bblk,T,hs)
    # Deferred normalization: bblk*T*hs multiplies, reciprocal on the EUP slot.
    out = out * pl.reciprocal(denom, approx=True)
    o_ref[...] = out.astype(o_ref.dtype)


def _pick_batch_block(B, target=8):
    """Largest divisor of B that is <= target while keeping the grid length >= 2
    (when B > 1) so the parallel grid axis can split across v7x's two cores."""
    cap = min(target, max(1, B // 2)) if B > 1 else 1
    bblk = cap
    while B % bblk:
        bblk -= 1
    return bblk


def _vmem_bytes_estimate(bblk, T, C, hs, training):
    rup = lambda v, m: -(-v // m) * m
    bf16, f32 = 2, 4
    Ts, Tl, Cl = rup(T, 8), rup(T, 128), rup(C, 128)
    hl, Hl = rup(hs, 128), rup(3 * hs, 128)
    x_tile = 2 * bblk * Ts * Cl * bf16                 # double-buffered x
    w_tile = 2 * rup(C, 8) * Hl * bf16                 # Wqkv (double-buffered)
    o_tile = 2 * bblk * Ts * hl * bf16                 # double-buffered out
    mask = (2 * bblk * Ts * Tl * bf16) if training else 0
    scratch = (bblk * Ts * Hl * (f32 + bf16)           # qkv f32 + bf16 copies
               + 3 * bblk * Ts * Tl * f32              # wei / p / temporaries
               + Ts * Tl * f32                         # causal bias
               + 2 * bblk * Ts * hl * f32)             # out accumulator
    est = x_tile + w_tile + o_tile + mask + scratch + (4 << 20)
    return int(min(64 << 20, max(8 << 20, est)))


def head_attention(x, w_qkv, *, training=False, dropout_mask=None,
                   out_dtype=jnp.bfloat16):
    """Single causal self-attention head (gpt.py Head.forward).

    x:      (B, T, C) float, cast to bf16 for the MXU.
    w_qkv:  (C, 3*head_size) fused [Wq | Wk | Wv], (in, out) layout, ideally
            stored in bf16 persistently by the caller.
    Returns (B, T, head_size) in `out_dtype` (bf16 default to halve writeback).
    """
    B, T, C = x.shape
    assert C == N_EMBD and T <= BLOCK_SIZE
    assert w_qkv.shape[0] == C and w_qkv.shape[1] % 3 == 0
    hs = w_qkv.shape[1] // 3
    if training:
        assert dropout_mask is not None and dropout_mask.shape == (B, T, T)

    xb = x.astype(jnp.bfloat16)
    wb = w_qkv.astype(jnp.bfloat16)
    scale = float(hs) ** -0.5

    bblk = _pick_batch_block(B)
    grid = (B // bblk,)

    kernel = functools.partial(_head_kernel, scale=scale, training=training, hs=hs)

    in_specs = [
        pl.BlockSpec((bblk, T, C), lambda g: (g, 0, 0)),   # x tile (bblk batches)
        pl.BlockSpec((C, 3 * hs), lambda g: (0, 0)),       # fused Wqkv (resident)
    ]
    args = [xb, wb]
    if training:
        in_specs.append(pl.BlockSpec((bblk, T, T), lambda g: (g, 0, 0)))
        args.append(dropout_mask.astype(jnp.bfloat16))     # bf16 keep-mask

    flops = B * (2 * T * C * 3 * hs + 2 * 2 * T * T * hs)
    bytes_accessed = (xb.size * 2 + wb.size * 2
                      + B * T * hs * jnp.dtype(out_dtype).itemsize
                      + (B * T * T * 2 if training else 0))

    out = pl.pallas_call(
        kernel,
        out_shape=jax.ShapeDtypeStruct((B, T, hs), out_dtype),
        grid=grid,
        in_specs=in_specs,
        out_specs=pl.BlockSpec((bblk, T, hs), lambda g: (g, 0, 0)),
        compiler_params=pltpu.CompilerParams(
            dimension_semantics=("parallel",),
            vmem_limit_bytes=_vmem_bytes_estimate(bblk, T, C, hs, training),
        ),
        cost_estimate=pl.CostEstimate(
            flops=flops, transcendentals=B * T * (T + 1),
            bytes_accessed=bytes_accessed),
    )(*args)
    return out


def head_reference(x, w_qkv, dropout_mask=None):
    """Pure-JAX reference mirroring the kernel's bf16/f32 mixed precision."""
    hs = w_qkv.shape[1] // 3
    xb = x.astype(jnp.bfloat16)
    wb = w_qkv.astype(jnp.bfloat16)
    qkv = jnp.einsum("btc,ch->bth", xb, wb, preferred_element_type=jnp.float32)
    q, k, v = qkv[..., :hs], qkv[..., hs:2 * hs], qkv[..., 2 * hs:]
    wei = jnp.einsum("bth,bsh->bts",
                     q.astype(jnp.bfloat16), k.astype(jnp.bfloat16),
                     preferred_element_type=jnp.float32) * (float(hs) ** -0.5)
    T = x.shape[1]
    causal = jnp.tril(jnp.ones((T, T), dtype=bool))
    wei = jnp.where(causal[None], wei, -jnp.inf)
    p = jax.nn.softmax(wei, axis=-1)
    if dropout_mask is not None:
        p = p * dropout_mask
    return jnp.einsum("bts,bsh->bth",
                      p.astype(jnp.bfloat16), v.astype(jnp.bfloat16),
                      preferred_element_type=jnp.float32)


if __name__ == "__main__":
    key = jax.random.PRNGKey(0)
    kx, kw, kd, kx2 = jax.random.split(key, 4)

    HEAD_SIZE = 64                      # n_embd // n_head (6 heads)

    # ---- small smoke test (B=2, T=8) ---------------------------------------
    B, T, C = 2, 8, N_EMBD
    x = jax.random.normal(kx, (B, T, C), dtype=jnp.float32)
    # Fused [Wq | Wk | Wv], stored persistently in bf16 (cast once, reused).
    w_qkv = (jax.random.normal(kw, (C, 3 * HEAD_SIZE), dtype=jnp.float32)
             * (C ** -0.5)).astype(jnp.bfloat16)

    y = jax.block_until_ready(head_attention(x, w_qkv, training=False))
    y_ref = head_reference(x, w_qkv)
    assert y.shape == (B, T, HEAD_SIZE)
    assert jnp.allclose(y.astype(jnp.float32), y_ref, atol=3e-2, rtol=3e-2), \
        "eval mismatch (small)"

    # ---- full-size test (B=8, T=block_size) exercises the real tiling ------
    B2, T2 = 8, BLOCK_SIZE
    x2 = jax.random.normal(kx2, (B2, T2, C), dtype=jnp.float32)
    y2 = jax.block_until_ready(head_attention(x2, w_qkv, training=False))
    y2_ref = head_reference(x2, w_qkv)
    assert y2.shape == (B2, T2, HEAD_SIZE)
    assert jnp.allclose(y2.astype(jnp.float32), y2_ref, atol=3e-2, rtol=3e-2), \
        "eval mismatch (T=256)"

    # ---- training mode: bf16 inverted-dropout keep mask (host-side RNG) ----
    keep = jax.random.bernoulli(kd, 1.0 - DROPOUT_P, (B2, T2, T2))
    drop_mask = keep.astype(jnp.float32) / (1.0 - DROPOUT_P)
    y3 = jax.block_until_ready(
        head_attention(x2, w_qkv, training=True, dropout_mask=drop_mask))
    y3_ref = head_reference(x2, w_qkv, dropout_mask=drop_mask)
    assert y3.shape == (B2, T2, HEAD_SIZE)
    assert jnp.allclose(y3.astype(jnp.float32), y3_ref, atol=3e-2, rtol=3e-2), \
        "train mismatch"

    print("KERNEL_OK")
</pallas_src>

<mosaic_0001>
module attributes {stable_mosaic.version = 11 : i64} {
  func.func @_head_kernel(%arg0: i32, %arg1: memref<1x8x384xbf16, #tpu.memory_space<vmem>>, %arg2: memref<384x192xbf16, #tpu.memory_space<vmem>>, %arg3: memref<1x8x64xbf16, #tpu.memory_space<vmem>>) attributes {dimension_semantics = [#tpu.dimension_semantics<parallel>], iteration_bounds = array<i64: 2>, scalar_prefetch = 0 : i64, scratch_operands = 0 : i64, tpu.core_type = #tpu.core_type<tc>, window_params = [{transform_indices = @transform_0, window_bounds = array<i64: 1, 8, 384>}, {pipeline_mode = #tpu.pipeline_mode<synchronous>, transform_indices = @transform_1, window_bounds = array<i64: 384, 192>}, {transform_indices = @transform_2, window_bounds = array<i64: 1, 8, 64>}]} {
    %c0 = arith.constant 0 : index
    %c0_0 = arith.constant 0 : index
    %c0_1 = arith.constant 0 : index
    %0 = vector.load %arg1[%c0, %c0_0, %c0_1] : memref<1x8x384xbf16, #tpu.memory_space<vmem>>, vector<1x8x384xbf16>
    %1 = vector.shape_cast %0 : vector<1x8x384xbf16> to vector<8x384xbf16>
    %c0_2 = arith.constant 0 : index
    %c0_3 = arith.constant 0 : index
    %2 = vector.load %arg2[%c0_2, %c0_3] : memref<384x192xbf16, #tpu.memory_space<vmem>>, vector<384x192xbf16>
    %cst = arith.constant dense<0.000000e+00> : vector<8x192xf32>
    %3 = tpu.matmul %1, %2, %cst {dimension_numbers = #tpu.dot_dimension_numbers<[1], [0], [0], [1], [0, 0, 1, 1], [], []>} : vector<8x384xbf16>, vector<384x192xbf16>, vector<8x192xf32> -> vector<8x192xf32>
    %4 = vector.extract_strided_slice %3 {offsets = [0, 0], sizes = [8, 64], strides = [1, 1]} : vector<8x192xf32> to vector<8x64xf32>
    %cst_4 = arith.constant 1.250000e-01 : f32
    %5 = vector.broadcast %cst_4 : f32 to vector<8x64xf32>
    %6 = arith.mulf %4, %5 : vector<8x64xf32>
    %7 = arith.truncf %6 : vector<8x64xf32> to vector<8x64xbf16>
    %8 = vector.shape_cast %7 : vector<8x64xbf16> to vector<1x8x64xbf16>
    %9 = vector.extract_strided_slice %3 {offsets = [0, 64], sizes = [8, 64], strides = [1, 1]} : vector<8x192xf32> to vector<8x64xf32>
    %10 = arith.truncf %9 : vector<8x64xf32> to vector<8x64xbf16>
    %11 = vector.shape_cast %10 : vector<8x64xbf16> to vector<1x8x64xbf16>
    %12 = vector.extract_strided_slice %3 {offsets = [0, 128], sizes = [8, 64], strides = [1, 1]} : vector<8x192xf32> to vector<8x64xf32>
    %13 = arith.truncf %12 : vector<8x64xf32> to vector<8x64xbf16>
    %14 = vector.shape_cast %13 : vector<8x64xbf16> to vector<1x8x64xbf16>
    %15 = tpu.iota {dimensions = array<i32: 0>} : vector<8x8xi32>
    %16 = tpu.iota {dimensions = array<i32: 1>} : vector<8x8xi32>
    %17 = arith.cmpi sge, %15, %16 : vector<8x8xi32>
    %cst_5 = arith.constant 0.000000e+00 : f32
    %cst_6 = arith.constant -1.000000e+30 : f32
    %18 = vector.broadcast %cst_5 : f32 to vector<8x8xf32>
    %19 = vector.broadcast %cst_6 : f32 to vector<8x8xf32>
    %20 = arith.select %17, %18, %19 : vector<8x8xi1>, vector<8x8xf32>
    "tpu.trace_start"() <{level = 10 : i32, message = "bqh,bkh->bqk"}> : () -> ()
    %cst_7 = arith.constant dense<0.000000e+00> : vector<1x8x8xf32>
    %21 = tpu.matmul %8, %11, %cst_7 {dimension_numbers = #tpu.dot_dimension_numbers<[2], [2], [1], [1], [0, 0, 0, 1, 1, 1], [0], [0]>} : vector<1x8x64xbf16>, vector<1x8x64xbf16>, vector<1x8x8xf32> -> vector<1x8x8xf32>
    "tpu.trace_stop"() : () -> ()
    %22 = vector.shape_cast %20 : vector<8x8xf32> to vector<1x8x8xf32>
    %23 = arith.addf %21, %22 : vector<1x8x8xf32>
    %cst_8 = arith.constant dense<0xFF800000> : vector<1x8xf32>
    %24 = vector.multi_reduction <maximumf>, %23, %cst_8 [2] : vector<1x8x8xf32> to vector<1x8xf32>
    %25 = vector.shape_cast %24 : vector<1x8xf32> to vector<1x8x1xf32>
    %26 = vector.broadcast %25 : vector<1x8x1xf32> to vector<1x8x8xf32>
    %27 = arith.subf %23, %26 : vector<1x8x8xf32>
    %28 = math.exp %27 : vector<1x8x8xf32>
    %cst_9 = arith.constant dense<0.000000e+00> : vector<1x8xf32>
    %29 = vector.multi_reduction <add>, %28, %cst_9 [2] : vector<1x8x8xf32> to vector<1x8xf32>
    %30 = vector.shape_cast %29 : vector<1x8xf32> to vector<1x8x1xf32>
    %31 = arith.truncf %28 : vector<1x8x8xf32> to vector<1x8x8xbf16>
    "tpu.trace_start"() <{level = 10 : i32, message = "bqk,bkh->bqh"}> : () -> ()
    %cst_10 = arith.constant dense<0.000000e+00> : vector<1x8x64xf32>
    %32 = tpu.matmul %31, %14, %cst_10 {dimension_numbers = #tpu.dot_dimension_numbers<[2], [1], [1], [2], [0, 0, 0, 1, 1, 2], [0], [0]>} : vector<1x8x8xbf16>, vector<1x8x64xbf16>, vector<1x8x64xf32> -> vector<1x8x64xf32>
    "tpu.trace_stop"() : () -> ()
    %33 = tpu.reciprocal %30 {approx = true} : vector<1x8x1xf32> -> vector<1x8x1xf32>
    %34 = vector.broadcast %33 : vector<1x8x1xf32> to vector<1x8x64xf32>
    %35 = arith.mulf %32, %34 : vector<1x8x64xf32>
    %36 = arith.truncf %35 : vector<1x8x64xf32> to vector<1x8x64xbf16>
    %c0_11 = arith.constant 0 : index
    %c0_12 = arith.constant 0 : index
    %c0_13 = arith.constant 0 : index
    %37 = vector.load %arg3[%c0_11, %c0_12, %c0_13] : memref<1x8x64xbf16, #tpu.memory_space<vmem>>, vector<1x8x64xbf16>
    tpu.vector_store %arg3[%c0_11, %c0_12, %c0_13], %36 {strides = array<i32>} : memref<1x8x64xbf16, #tpu.memory_space<vmem>>, vector<1x8x64xbf16>,
    return
  }
  func.func @transform_0(%arg0: i32) -> (i32, i32, i32) {
    %c0_i32 = arith.constant 0 : i32
    %c0_i32_0 = arith.constant 0 : i32
    %c0_i32_1 = arith.constant 0 : i32
    return %arg0, %c0_i32, %c0_i32_0 : i32, i32, i32
  }
  func.func @transform_1(%arg0: i32) -> (i32, i32) {
    %c0_i32 = arith.constant 0 : i32
    %c0_i32_0 = arith.constant 0 : i32
    %c0_i32_1 = arith.constant 0 : i32
    return %c0_i32, %c0_i32_0 : i32, i32
  }
  func.func @transform_2(%arg0: i32) -> (i32, i32, i32) {
    %c0_i32 = arith.constant 0 : i32
    %c0_i32_0 = arith.constant 0 : i32
    %c0_i32_1 = arith.constant 0 : i32
    return %arg0, %c0_i32, %c0_i32_0 : i32, i32, i32
  }
}

</mosaic_0001>

<bundles_post_ra>
// kernel: tpu_custom_call.1
= control target key start
LH: loop header
LB: loop body
LE: loop exit
PB: predicated region body
PF: predicated region fallthrough
CT: control target
= control target key end

     0   :  { %7 = vsyncpa [#allocation3], 0  ;;  %s1258_s0 = inlined_call_operand.vmem [shape: bf16[2,8,384], index: 0, kind: input, shape index: {}]   ;;  %s1259_s1 = inlined_call_operand.vmem [shape: bf16[384,192], index: 1, kind: input, shape index: {}]   ;;  %s1260_s2 = inlined_call_operand.hbm [shape: bf16[2,8,64], index: 2, kind: output, shape index: {}]  }
   0x1   :  { %9 = vsyncpa [#allocation3 + $0x1], 0  ;;  %s1012_s9 = smov 0   ;;  %s1014_s10 = smov 0  }
   0x2   :  { %s1016_s11 = smov 0   ;;  %s1018_s12 = smov 0  }
   0x3 LB: > { %s1033_s13 = sadd.s32 4294967295, %s989_s12   ;;  %s722_s14 = sadd.s32 4294967294, %s989_s12   ;;  %s989_s12 = sphi %s1018_s12, %s1266_s12   ;;  %s985_s11 = sphi %s1016_s11, %s1265_s11   ;;  %s981_s10 = sphi %s1014_s10, %s1264_s10   ;;  %s977_s9 = sphi %s1012_s9, %s1263_s9  }
   0x4   : > { %s1037_s15 = sadd.s32 1, %s989_s12   ;;  %s69_s16 = sadd.s32 1, %s985_s11 }
   0x5   : > { %s66_s17 = ssub.s32 %s989_s12, %s1037_s15  ;;  %p79_p0 = scmp.ne.s32.totalorder %s985_s11, %s981_s10 }
   0x6   : > { %p67_p1 = scmp.eq.s32.totalorder %s66_s17, 0  ;;  %p80_p2 = scmp.eq.s32.totalorder %s1033_s13, 1 }
   0x7   : > { %p85_p3 = scmp.ne.s32.totalorder %s981_s10, %s977_s9  ;;  %p86_p4 = scmp.eq.s32.totalorder %s722_s14, 1 }
   0x8   : > { %s1048_s18 = scalar_select %p67_p1, %s985_s11, %s69_s16  }
   0x9   : > { %p1050_p5 = por %p80_p2, %p79_p0  ;;  %p1054_p6 = por %p86_p4, %p85_p3 }
   0xa   : > { %p725_p7 = scmp.ge.s32.totalorder %s989_s12, 1  ;;  %p115_p8 = scmp.lt.s32.totalorder %s989_s12, 3 }
   0xc   : > { %p116_p9 = pnand %p725_p7, %p115_p8 }
   0xd   : > { %v848_v0 = vld [vmem:[%s1259_s1 + $0x4] ss:$8 sps:$4 sm:$0xff] (!%p116_p9)   ;;  %v850_v1 = vld [vmem:[%s1259_s1] ss:$8 sps:$4 sm:$0xff] (!%p116_p9)   ;;  %v991_v2 = vmov (!%p116_p9), 0   ;;  %p137_p10 = scmp.lt.s32.totalorder (!%p116_p9), %s1033_s13, 1 }
   0xe   : > { %119 = sbr.rel (%p116_p9) target bundleno = 1021 (0x3fd), region = 28  ;;  %517 = vmatprep.mubr.bf16.mxu1 (!%p116_p9), %v991_v2  ;;  %444 = vmatprep.subr.bf16.mxu0 (!%p116_p9), %v848_v0  ;;  %v851_v3 = vld [vmem:[%s1259_s1 + $0x14] ss:$8 sps:$4 sm:$0xff] (!%p116_p9)   ;;  %v853_v4 = vld [vmem:[%s1259_s1 + $0x10] ss:$8 sps:$4 sm:$0xff] (!%p116_p9)   ;;  %v992_v57 = vmov (!%p116_p9), 0.0  }
   0xf   : > { %445 = vmatpush1.bf16.msra.mxu0 (!%p116_p9), %v850_v1  ;;  %v854_v5 = vld [vmem:[%s1259_s1 + $0x24] ss:$8 sps:$4 sm:$0xff] (!%p116_p9)   ;;  %v856_v6 = vld [vmem:[%s1259_s1 + $0x20] ss:$8 sps:$4 sm:$0xff] (!%p116_p9)   ;;  %v857_v7 = vld [vmem:[%s1259_s1 + $0x34] ss:$8 sps:$4 sm:$0xff] (!%p116_p9)  }
  0x10   : > { %446 = vmatprep.subr.bf16.mxu0 (!%p116_p9), %v851_v3  ;;  %v859_v8 = vld [vmem:[%s1259_s1 + $0x30] ss:$8 sps:$4 sm:$0xff] (!%p116_p9)   ;;  %v872_v9 = vld [vmem:[%s1259_s1 + $0x104] ss:$8 sps:$4 sm:$0xff] (!%p116_p9)   ;;  %v874_v10 = vld [vmem:[%s1259_s1 + $0x100] ss:$8 sps:$4 sm:$0xff] (!%p116_p9)  }
  0x11   : > { %v860_v11 = vld [vmem:[%s1259_s1 + $0x44] ss:$8 sps:$4 sm:$0xff] (!%p116_p9)   ;;  %485 = vmatprep.subr.bf16.mxu1 (!%p116_p9), %v872_v9  ;;  %v878_v12 = vld [vmem:[%s1259_s1 + $0x114] ss:$8 sps:$4 sm:$0xff] (!%p116_p9)   ;;  %v880_v13 = vld [vmem:[%s1259_s1 + $0x110] ss:$8 sps:$4 sm:$0xff] (!%p116_p9)  }
  0x12   : > { %486 = vmatpush1.bf16.msra.mxu1 (!%p116_p9), %v874_v10  ;;  %v862_v14 = vld [vmem:[%s1259_s1 + $0x40] ss:$8 sps:$4 sm:$0xff] (!%p116_p9)   ;;  %v863_v15 = vld [vmem:[%s1259_s1 + $0x54] ss:$8 sps:$4 sm:$0xff] (!%p116_p9)   ;;  %v884_v16 = vld [vmem:[%s1259_s1 + $0x124] ss:$8 sps:$4 sm:$0xff] (!%p116_p9)  }
  0x13   : > { %447 = vmatpush1.bf16.msra.mxu0 (!%p116_p9), %v853_v4  ;;  %487 = vmatprep.subr.bf16.mxu1 (!%p116_p9), %v878_v12  ;;  %v886_v17 = vld [vmem:[%s1259_s1 + $0x120] ss:$8 sps:$4 sm:$0xff] (!%p116_p9)   ;;  %v865_v18 = vld [vmem:[%s1259_s1 + $0x50] ss:$8 sps:$4 sm:$0xff] (!%p116_p9)   ;;  %v890_v19 = vld [vmem:[%s1259_s1 + $0x134] ss:$8 sps:$4 sm:$0xff] (!%p116_p9)  }
  0x14   : > { %448 = vmatprep.subr.bf16.mxu0 (!%p116_p9), %v854_v5  ;;  %v866_v20 = vld [vmem:[%s1259_s1 + $0x64] ss:$8 sps:$4 sm:$0xff] (!%p116_p9)   ;;  %v892_v21 = vld [vmem:[%s1259_s1 + $0x130] ss:$8 sps:$4 sm:$0xff] (!%p116_p9)   ;;  %v868_v22 = vld [vmem:[%s1259_s1 + $0x60] ss:$8 sps:$4 sm:$0xff] (!%p116_p9)  }
  0x15   : > { %s138_s23 = scalar_select %p137_p10, %s1033_s13, 1  ;;  %v896_v23 = vld [vmem:[%s1259_s1 + $0x144] ss:$8 sps:$4 sm:$0xff]   ;;  %v869_v24 = vld [vmem:[%s1259_s1 + $0x74] ss:$8 sps:$4 sm:$0xff]   ;;  %vm993_vm0 = vmmov 0  }
  0x16   : > { %488 = vmatpush1.bf16.msra.mxu1 %v880_v13  ;;  %v898_v25 = vld [vmem:[%s1259_s1 + $0x140] ss:$8 sps:$4 sm:$0xff]   ;;  %v871_v26 = vld [vmem:[%s1259_s1 + $0x70] ss:$8 sps:$4 sm:$0xff]   ;;  %v902_v27 = vld [vmem:[%s1259_s1 + $0x154] ss:$8 sps:$4 sm:$0xff]  }
  0x17   : > { %449 = vmatpush1.bf16.msra.mxu0 %v856_v6  ;;  %489 = vmatprep.subr.bf16.mxu1 %v884_v16  ;;  %s803_s4 = smul.u32 12, %s138_s23  ;;  %v875_v28 = vld [vmem:[%s1259_s1 + $0x84] ss:$8 sps:$4 sm:$0xff]   ;;  %v904_v29 = vld [vmem:[%s1259_s1 + $0x150] ss:$8 sps:$4 sm:$0xff]   ;;  %s994_s28 = smov 64  }
  0x18   : > { %450 = vmatprep.subr.bf16.mxu0 %v857_v7  ;;  %v877_v30 = vld [vmem:[%s1259_s1 + $0x80] ss:$8 sps:$4 sm:$0xff]   ;;  %v908_v31 = vld [vmem:[%s1259_s1 + $0x164] ss:$8 sps:$4 sm:$0xff]   ;;  %v881_v32 = vld [vmem:[%s1259_s1 + $0x94] ss:$8 sps:$4 sm:$0xff]   ;;  %v530_v7 = vlaneseq }
  0x19   : > { %s141_s24 = scalar_lea.vmem %s1258_s0, %s803_s4  ;;  %v910_v35 = vld [vmem:[%s1259_s1 + $0x160] ss:$8 sps:$4 sm:$0xff]   ;;  %v883_v36 = vld [vmem:[%s1259_s1 + $0x90] ss:$8 sps:$4 sm:$0xff]   ;;  %v914_v37 = vld [vmem:[%s1259_s1 + $0x174] ss:$8 sps:$4 sm:$0xff]  }
  0x1a   : > { %490 = vmatpush1.bf16.msra.mxu1 %v886_v17  ;;  %v143_v33 = vld [vmem:[%s141_s24] sm:$0xff]  ;;  %v916_v39 = vld [vmem:[%s1259_s1 + $0x170] ss:$8 sps:$4 sm:$0xff]   ;;  %v893_v41 = vld [vmem:[%s1259_s1 + $0xb4] ss:$8 sps:$4 sm:$0xff]   ;;  %vm539_vm1 = vcmask 523264  }
  0x1b   : > { %451 = vmatpush1.bf16.msra.mxu0 %v859_v8  ;;  %491 = vmatprep.subr.bf16.mxu1 %v890_v19  ;;  %v729_v34 = vcombine.high %v143_v33, %v143_v33  ;;  %v887_v38 = vld [vmem:[%s1259_s1 + $0xa4] ss:$8 sps:$4 sm:$0xff]   ;;  %v889_v40 = vld [vmem:[%s1259_s1 + $0xa0] ss:$8 sps:$4 sm:$0xff]   ;;  %v895_v43 = vld [vmem:[%s1259_s1 + $0xb0] ss:$8 sps:$4 sm:$0xff]   ;;  %v728_v52 = vcombine.low %v143_v33, %v143_v33 }
  0x1c   : > { %452 = vmatprep.subr.bf16.mxu0 %v860_v11  ;;  %v920_v42 = vld [vmem:[%s141_s24 + $0x8] ss:$0 sps:$4 sm:$0xff]   ;;  %v899_v44 = vld [vmem:[%s1259_s1 + $0xc4] ss:$8 sps:$4 sm:$0xff]   ;;  %v905_v46 = vld [vmem:[%s1259_s1 + $0xd4] ss:$8 sps:$4 sm:$0xff]  }
  0x1d   : > { %476 = vmatprep.mubr.bf16.mxu0 %v729_v34  ;;  %v901_v45 = vld [vmem:[%s1259_s1 + $0xc0] ss:$8 sps:$4 sm:$0xff]   ;;  %v907_v47 = vld [vmem:[%s1259_s1 + $0xd0] ss:$8 sps:$4 sm:$0xff]   ;;  %v911_v48 = vld [vmem:[%s1259_s1 + $0xe4] ss:$8 sps:$4 sm:$0xff]  }
  0x1e   : > { %492 = vmatpush1.bf16.msra.mxu1 %v892_v21  ;;  %v913_v49 = vld [vmem:[%s1259_s1 + $0xe0] ss:$8 sps:$4 sm:$0xff]   ;;  %v917_v50 = vld [vmem:[%s1259_s1 + $0xf4] ss:$8 sps:$4 sm:$0xff]   ;;  %v919_v51 = vld [vmem:[%s1259_s1 + $0xf0] ss:$8 sps:$4 sm:$0xff]  }
  0x1f   : > { %453 = vmatpush1.bf16.msra.mxu0 %v862_v14  ;;  %493 = vmatprep.subr.bf16.mxu1 %v896_v23  ;;  %vm600_vm2 = vcmask 1043456   ;;  %v531_v8 = vshrl.u32 %v530_v7, 7  ;;  %v533_v9 = vand.u32 127, %v530_v7  ;;  %v995_v10 = vmov -1e+30   ;;  %s134_s29 = sand.u32 1, %s981_s10  }
  0x20   : > { %454 = vmatprep.subr.bf16.mxu0 %v863_v15  ;;  %vm586_vm4 = vcmask 64512   ;;  %s726_s30 = sshll.u32 %s134_s29, 2  ;;  %s782_s3 = sshll.u32 %s1033_s13, 6  ;;  %vm647_vm5 = vcmask 519168  }
  0x21   : > { %vm534_vm3 = vcmp.ge.s32.totalorder %v531_v8, %v533_v9  ;;  %s136_s5 = scalar_lea.vmem [#allocation2], %s726_s30  ;;  %s1216_s24 = scalar_lea.hbm %s1260_s2, %s782_s3 }
  0x22   : > { %494 = vmatpush1.bf16.msra.mxu1 %v898_v25  ;;  %v535_v11 = vsel %vm534_vm3, 0.0, %v995_v10  ;;  %s663_s4 = sshll.u32 %s136_s5, 4  ;;  %s650_s13 = scalar_lea.sflag [#allocation3], %s134_s29  ;;  %s1218_s4 = int_to_ptr.vmem [resolvable:$true] %s663_s4 }
  0x23   : > { %455 = vmatpush1.bf16.msra.mxu0 %v865_v18  ;;  %495 = vmatprep.subr.bf16.mxu1 %v902_v27  ;;  %s927_s8 = scalar_lea.vmem %s1218_s4, 64  ;;  %s996_s14 = smov [#allocation2]  }
  0x24   : > { %456 = vmatprep.subr.bf16.mxu0 %v866_v20  ;;  %p928_p11 = scmp.ne.s32.totalorder %s1218_s4, %s927_s8  ;;  %s931_s16 = sshll.u32 %s996_s14, 4  ;;  %s932_s16 = int_to_ptr.vmem [resolvable:$false] %s931_s16 }
  0x25   : > { %s933_s17 = scalar_lea.vmem %s932_s16, 128  ;;  %p934_p0 = scmp.lt.s32.totalorder %s1218_s4, %s932_s16 }
  0x26   : > { %496 = vmatpush1.bf16.msra.mxu1 %v904_v29  ;;  %p929_p12 = pnand %p928_p11, %p1050_p5  ;;  %p935_p1 = scmp.lt.s32.totalorder %s933_s17, %s927_s8 }
  0x27   : > { %457 = vmatpush1.bf16.msra.mxu0 %v868_v22  ;;  %497 = vmatprep.subr.bf16.mxu1 %v908_v31 }
  0x28   : > { %458 = vmatprep.subr.bf16.mxu0 %v869_v24  ;;  %p930_p13 = pneg %p929_p12  ;;  %p936_p2 = por %p935_p1, %p934_p0 }
  0x2a   : > { %498 = vmatpush1.bf16.msra.mxu1 %v910_v35  ;;  %p937_p3 = pnand %p936_p2, %p930_p13 }
  0x2b   : > { %459 = vmatpush1.bf16.msra.mxu0 %v871_v26  ;;  %499 = vmatprep.subr.bf16.mxu1 %v914_v37 }
  0x2c   : > { %460 = vmatprep.subr.bf16.mxu0 %v875_v28 }
  0x2e   : > { %500 = vmatpush1.bf16.msra.mxu1 %v916_v39 }
  0x2f   : > { %461 = vmatpush1.bf16.msra.mxu0 %v877_v30  ;;  %789 = vmatprep.subr.bf16.mxu1 %v992_v57 }
  0x30   : > { %462 = vmatprep.subr.bf16.mxu0 %v881_v32 }
  0x31   : > { %518 = vmatmul.mubr.bf16.vlgmr.msra.gmra.mrb[0].mxu1 %v920_v42 }
  0x32   : > { %791 = vmatprep.mubr.msk.bf16.mxu1 %vm993_vm0, %v992_v57 }
  0x33   : > { %463 = vmatpush1.bf16.msra.mxu0 %v883_v36 }
  0x34   : > { %464 = vmatprep.subr.bf16.mxu0 %v887_v38 }
  0x37   : > { %465 = vmatpush1.bf16.msra.mxu0 %v889_v40 }
  0x38   : > { %466 = vmatprep.subr.bf16.mxu0 %v893_v41 }
  0x3b   : > { %467 = vmatpush1.bf16.msra.mxu0 %v895_v43 }
  0x3c   : > { %468 = vmatprep.subr.bf16.mxu0 %v899_v44 }
  0x3f   : > { %469 = vmatpush1.bf16.msra.mxu0 %v901_v45 }
  0x40   : > { %470 = vmatprep.subr.bf16.mxu0 %v905_v46 }
  0x43   : > { %471 = vmatpush1.bf16.msra.mxu0 %v907_v47 }
  0x44   : > { %472 = vmatprep.subr.bf16.mxu0 %v911_v48 }
  0x47   : > { %473 = vmatpush1.bf16.msra.mxu0 %v913_v49 }
  0x48   : > { %474 = vmatprep.subr.bf16.mxu0 %v917_v50 }
  0x4b   : > { %475 = vmatpush1.bf16.msra.mxu0 %v919_v51 }
  0x4e   : > { %477 = vmatmul.mubr.bf16.vlgmr.msra.gmra.mrb[0].mxu0 %v728_v52 }
 0x104   : > { %v519_v53 = vpop.f32.mrb[0].mxu1 }
 0x105   : > { %v521_v54 = vpop.f32.mrb[1].mxu1 }
 0x106   : > { %v523_v55 = vpop.f32.mrb[2].mxu1 }
 0x107   : > { %v524_v56 = vpop.f32.mrb[3].mxu1 }
 0x121   : > { %v478_v58 = vpop.f32.mrb[0].mxu0 }
 0x122   : > { %v520_v59 = vadd.f32 %v519_v53, %v478_v58  ;;  %v480_v60 = vpop.f32.mrb[1].mxu0 }
 0x123   : > { %v522_v61 = vadd.f32 %v521_v54, %v480_v60  ;;  %v482_v62 = vpop.f32.mrb[2].mxu0 }
 0x124   : > { %v483_v63 = vpop.f32.mrb[3].mxu0  ;;  %v528_v0 = vpack.c.bf16 %v520_v59, %v520_v59  ;;  %v526_v3 = vmul.f32 0.125, %v520_v59 }
 0x125   : > { %v529_v4 = vpack.c.bf16 %v522_v61, %v522_v61 }
 0x126   : > { %537 = vrot.lane.b32.xlu0 %v528_v0, %s994_s28  ;;  %v527_v5 = vpack.c.bf16 %v526_v3, %v526_v3 }
 0x127   : > { %v602_v6 = vsel %vm600_vm2, %v529_v4, 0 }
 0x198   : > { %v538_v1 = vpop.permute.xlu0 %537 }
 0x199   : > { %v544_v2 = vsel %vm539_vm1, %v538_v1, 0 }
 0x19a   : > { %790 = vmatpush3.bf16.xpose.msra.mxu1 %v544_v2 }
 0x19b   : > { %795 = vmatprep.subr.bf16.mxu1 %v992_v57 }
 0x1a1   : > { %792 = vmatmul.mubr.msk.bf16.vlgmr.msra.gmra.mrb[4].mxu1 %vm539_vm1, %v527_v5 }
 0x1a2   : > { %796 = vmatpush3.bf16.msra.mxu1 %v602_v6  ;;  %797 = vmatprep.mubr.msk.bf16.mxu1 %vm993_vm0, %v992_v57 }
 0x274   : > { %v580_v12 = vpop.f32.mrb[4].mxu1 }
 0x275   : > { %v581_v13 = vadd.f32 %v580_v12, %v535_v11  ;;  %v793_v14 = vpop.f32.mrb[5].mxu1 }
 0x276   : > { %v583_v15 = vpop.f32.mrb[6].mxu1 }
 0x277   : > { %v794_v16 = vpop.f32.mrb[7].mxu1  ;;  %v587_v17 = vsel %vm586_vm4, %v581_v13, -inf }
 0x278   : > { %588 = vmax.xlane.f32.xlu0 %v587_v17 }
 0x305   : > { %v589_v18 = vpop.xlane.xlu0 %588 }
 0x306   : > { %v590_v19 = vsub.f32 %v581_v13, %v589_v18 }
 0x308   : > { %v591_v20 = vmul.f32 1.442695, %v590_v19 }
 0x30a   : > { %923 = vpow2.f32 %v591_v20 }
 0x314   : > { %v924_v21 = vpop.eup %923 }
 0x315   : > { %v593_v22 = vsel %vm586_vm4, %v924_v21, 0.0  ;;  %v596_v23 = vpack.c.bf16 %v924_v21, %v924_v21 }
 0x316   : > { %594 = vadd.xlane.f32.xlu1 %v593_v22 }
 0x317   : > { %798 = vmatmul.mubr.msk.bf16.vlgmr.msra.gmra.mrb[8].mxu1 %vm586_vm4, %v596_v23 }
 0x3a3   : > { %v595_v24 = vpop.xlane.xlu1 %594 }
 0x3a4   : > { %925 = vrcp.f32 %v595_v24 }
 0x3ae   : > { %v926_v25 = vpop.eup %925 }
 0x3ea   : > { %v638_v26 = vpop.f32.mrb[8].mxu1 }
 0x3eb   : > { %v645_v27 = vmul.f32 %v926_v25, %v638_v26  ;;  %v799_v28 = vpop.f32.mrb[9].mxu1 }
 0x3ec   : > { %v641_v29 = vpop.f32.mrb[10].mxu1 }
 0x3ed   : > { %v646_v30 = vpack.c.bf16 %v645_v27, %v645_v27  ;;  %v800_v31 = vpop.f32.mrb[11].mxu1 }
 0x3ef   : > { %648 = vst.msk [vmem:[%s136_s5] sm:$0xf] %vm647_vm5, %v646_v30 }
 0x3f0   : > { %940 = shalt.err (!%p937_p3)
}
 0x3f1   : > { %s941_s21 = scalar_lea.hbm %s1216_s24, 64  ;;  %s945_s25 = scalar_lea.hbm %s1260_s2, 128 }
 0x3f2   : > { %p942_p4 = scmp.ne.s32.totalorder %s1216_s24, %s941_s21  ;;  %p946_p9 = scmp.lt.u32.totalorder %s1216_s24, %s1260_s2 }
 0x3f3   : > { %p947_p10 = scmp.lt.u32.totalorder %s945_s25, %s941_s21  ;;  %p949_p12 = scmp.lt.u32.totalorder %s941_s21, %s1216_s24 }
 0x3f4   : > { %p943_p7 = pnand %p942_p4, %p1050_p5 }
 0x3f5   : > { %p948_p11 = por %p947_p10, %p946_p9 }
 0x3f6   : > { %p944_p8 = pneg %p943_p7 }
 0x3f7   : > { %p950_p13 = por %p949_p12, %p948_p11 }
 0x3f9   : > { %p951_p0 = pnand %p950_p13, %p944_p8 }
 0x3fb   : > { %954 = shalt.err (!%p951_p0)
}
 0x3fc   : > { %804 = dma.vmem_to_hbm [thread:$0]  (%p1050_p5), %s1218_s4, 64, %s1216_s24, %s650_s13  }
 0x3fd PF: > { %p810_p1 = scmp.ge.s32.totalorder %s989_s12, 2  ;;  %s675_s28 = sand.u32 1, %s977_s9  }
 0x3fe   : > { %s676_s29 = scalar_lea.sflag [#allocation3], %s675_s28 }
 0x3ff   : > { %p807_p2 = pnand %p810_p1, %p1054_p6 }
 0x401   : > { %972 = dma.done.wait (!%p807_p2), %s676_s29, 64  }
 0x402   : > { %974 = vsyncadd (!%p807_p2), %s676_s29, 4294967232  ;;  %p12_p3 = scmp.ge.s32.totalorder %s1037_s15, 4   ;;  %s1263_s9 = smov %s981_s10 }
 0x403   : > { %s1264_s10 = smov %s985_s11  ;;  %s1265_s11 = smov %s1048_s18 }
 0x404   : > { %s1266_s12 = smov %s1037_s15  ;;  %14 = sbr.rel (!%p12_p3) target bundleno = 3 (0x3), region = 63 }
 0x40b   :  { %681 = vsyncpa [#allocation3], 1 }
 0x40c   :  { %683 = vsyncpa [#allocation3 + $0x1], 1 }

</bundles_post_ra>
